<compile_context>
chip_gen: v7x
topology: tpu7x:2x2x1
jax: 0.10.0
libtpu: 0.0.40
codegen_flags: <defaults>
</compile_context>

<pallas_src>
import functools

import jax
import jax.numpy as jnp
from jax import lax
from jax.experimental import pallas as pl
from jax.experimental.pallas import tpu as pltpu


def _round_up(n, m):
    return (n + m - 1) // m * m


def _newton_recip(d):
    """EUP approximate reciprocal + one Newton correction (~f32 accuracy)."""
    r = pl.reciprocal(d, approx=True)
    return r * (2.0 - d * r)


def _attn_decoder_kernel(q_ref, enc_ref, wh_ref, bh_ref, wox_ref, woa_ref, bo_ref,
                         out_ref, x_sc, m_sc, l_sc, acc_sc,
                         *, seq_len, ts, masked):
    # q_ref  : (TB, H)   batch/steps of queries (f32)
    # enc_ref: (TS, H)   one sequence tile of encoder outputs (mm dtype)
    # wh_ref : (H, H)    hidden_layer weight, pre-transposed (in, out)
    # bh_ref : (1, H)    f32
    # wox_ref: (H, O)    out weight for the x half of the concat (pre-split)
    # woa_ref: (H, O)    out weight for the attn-applied half
    # bo_ref : (1, O)    f32
    # out_ref: (TB, O)
    kv = pl.program_id(1)
    mm_dtype = wh_ref.dtype  # matmul operand dtype (f32 or bf16)

    @pl.when(kv == 0)
    def _init():
        # x = relu(q @ W_h.T + b_h), kept in f32 scratch across kv tiles.
        x = jnp.dot(q_ref[...].astype(mm_dtype), wh_ref[...],
                    preferred_element_type=jnp.float32)
        x_sc[...] = jnp.maximum(x + bh_ref[...], 0.0)
        m_sc[...] = jnp.full_like(m_sc, -1e30)
        l_sc[...] = jnp.zeros_like(l_sc)
        acc_sc[...] = jnp.zeros_like(acc_sc)

    x = x_sc[...]
    enc = enc_ref[...]

    # Attention scores for this sequence tile: contract H directly (no transpose).
    s = lax.dot_general(x.astype(mm_dtype), enc,
                        dimension_numbers=(((1,), (1,)), ((), ())),
                        preferred_element_type=jnp.float32)       # (TB, TS)
    if masked:
        key_idx = kv * ts + lax.broadcasted_iota(jnp.int32, s.shape, 1)
        s = jnp.where(key_idx < seq_len, s, -1e30)

    # Online (flash-style) softmax accumulation over the sequence axis.
    m_prev = m_sc[...]
    m_new = jnp.maximum(m_prev, jnp.max(s, axis=-1, keepdims=True))
    alpha = jnp.exp(m_prev - m_new)
    p = jnp.exp(s - m_new)                                        # (TB, TS) f32
    l_sc[...] = alpha * l_sc[...] + jnp.sum(p, axis=-1, keepdims=True)
    acc_sc[...] = alpha * acc_sc[...] + jnp.dot(p.astype(mm_dtype), enc,
                                                preferred_element_type=jnp.float32)
    m_sc[...] = m_new

    @pl.when(kv == pl.num_programs(1) - 1)
    def _finalize():
        applied = acc_sc[...] * _newton_recip(l_sc[...])          # (TB, H) f32
        # concat([x, applied]) @ W_o.T as a split matmul (no cross-lane concat).
        logits = (jnp.dot(x_sc[...].astype(mm_dtype), wox_ref[...],
                          preferred_element_type=jnp.float32)
                  + jnp.dot(applied.astype(mm_dtype), woa_ref[...],
                            preferred_element_type=jnp.float32)
                  + bo_ref[...])                                  # (TB, O)
        logits = logits - jnp.max(logits, axis=-1, keepdims=True)
        e = jnp.exp(logits)
        out_ref[...] = e * _newton_recip(jnp.sum(e, axis=-1, keepdims=True))


def prepare_attn_decoder_params(w_h, b_h, w_o, b_o, param_dtype=jnp.float32):
    """One-time weight prep (hoisted out of the per-call path):
    transpose to (in, out), pre-split W_o at the concat boundary, optional bf16
    cast for MXU operands. Biases stay f32."""
    H = w_h.shape[0]
    O = w_o.shape[0]
    wh_t = jnp.asarray(w_h, jnp.float32).T.astype(param_dtype)   # (H, H)
    wo_t = jnp.asarray(w_o, jnp.float32).T                       # (2H, O)
    return dict(
        wh=wh_t,
        bh=jnp.asarray(b_h, jnp.float32).reshape(1, H),
        wox=wo_t[:H, :].astype(param_dtype),                     # (H, O)
        woa=wo_t[H:, :].astype(param_dtype),                     # (H, O)
        bo=jnp.asarray(b_o, jnp.float32).reshape(1, O),
    )


@functools.partial(jax.jit, static_argnums=(3, 4))
def _attn_decoder_pallas(queries, encoder_outputs, params, tb, ts):
    B, H = queries.shape
    S = encoder_outputs.shape[0]
    O = params["bo"].shape[-1]
    mm_dtype = params["wh"].dtype

    b_pad = _round_up(B, tb)
    s_pad = _round_up(S, ts)

    q = jnp.asarray(queries, jnp.float32)
    if b_pad != B:
        q = jnp.pad(q, ((0, b_pad - B), (0, 0)))
    enc = jnp.asarray(encoder_outputs, jnp.float32).astype(mm_dtype)
    if s_pad != S:
        enc = jnp.pad(enc, ((0, s_pad - S), (0, 0)))

    kernel = functools.partial(_attn_decoder_kernel,
                               seq_len=S, ts=ts, masked=(s_pad != S))

    out = pl.pallas_call(
        kernel,
        out_shape=jax.ShapeDtypeStruct((b_pad, O), jnp.float32),
        grid_spec=pltpu.PrefetchScalarGridSpec(
            num_scalar_prefetch=0,
            grid=(b_pad // tb, s_pad // ts),
            in_specs=[
                pl.BlockSpec((tb, H), lambda b, k: (b, 0)),   # queries
                pl.BlockSpec((ts, H), lambda b, k: (k, 0)),   # encoder outputs (seq tiled)
                pl.BlockSpec((H, H), lambda b, k: (0, 0)),    # W_h^T (resident)
                pl.BlockSpec((1, H), lambda b, k: (0, 0)),    # b_h
                pl.BlockSpec((H, O), lambda b, k: (0, 0)),    # W_o^T[:H]
                pl.BlockSpec((H, O), lambda b, k: (0, 0)),    # W_o^T[H:]
                pl.BlockSpec((1, O), lambda b, k: (0, 0)),    # b_o
            ],
            out_specs=pl.BlockSpec((tb, O), lambda b, k: (b, 0)),
            scratch_shapes=[
                pltpu.VMEM((tb, H), jnp.float32),   # x = relu(linear(q))
                pltpu.VMEM((tb, 1), jnp.float32),   # running max
                pltpu.VMEM((tb, 1), jnp.float32),   # running sum
                pltpu.VMEM((tb, H), jnp.float32),   # context accumulator
            ]),
        compiler_params=pltpu.CompilerParams(
            dimension_semantics=("parallel", "arbitrary"),
            vmem_limit_bytes=32 * 1024 * 1024),
    )(q, enc, params["wh"], params["bh"], params["wox"], params["woa"], params["bo"])
    return out[:B]


def attn_decoder_fused(queries, encoder_outputs, params, *, tb=8, ts=128):
    """Fused entry point: queries (B, H) = B decode-step queries sharing one
    encoder_outputs (S, H). Returns (B, O) softmax outputs (f32)."""
    B, H = queries.shape
    S = encoder_outputs.shape[0]
    tb = _round_up(min(int(tb), _round_up(B, 8)), 8)
    ts = _round_up(min(int(ts), _round_up(S, 8)), 8)
    return _attn_decoder_pallas(queries, encoder_outputs, params, tb, ts)


def attn_decoder(inp, encoder_outputs, params):
    """Original module semantics: inp (1, 1, H) -> (1, output_size)."""
    H = inp.shape[-1]
    return attn_decoder_fused(inp.reshape(1, H), encoder_outputs, params)


def attn_decoder_ref(inp, encoder_outputs, w_h, b_h, w_o, b_o):
    """Pure-JAX reference mirroring the PyTorch forward (single step)."""
    x = jax.nn.relu(inp @ w_h.T + b_h)                       # (1, 1, H)
    q = x[0][0]                                              # (H,)
    scores = q @ encoder_outputs.T                           # (S,)
    attn = jax.nn.softmax(scores, axis=0)                    # (S,)
    applied = attn[None, None, :] @ encoder_outputs[None]    # (1, 1, H)
    concat = jnp.concatenate((x[0], applied[0]), axis=1)     # (1, 2H)
    return jax.nn.softmax(concat @ w_o.T + b_o, axis=1)      # (1, O)


if __name__ == "__main__":
    H = 32      # input_size (hidden)
    S = 8       # encoder sequence length
    O = 8       # output_size
    B = 4       # fused decode steps / batched queries

    key = jax.random.PRNGKey(0)
    k1, k2, k3, k4, k5, k6, k7 = jax.random.split(key, 7)

    # Deterministic synthetic parameters (shapes from nn.Linear in __init__).
    w_h = jax.random.normal(k1, (H, H), jnp.float32) * 0.1       # hidden_layer.weight
    b_h = jax.random.normal(k2, (H,), jnp.float32) * 0.1         # hidden_layer.bias
    w_o = jax.random.normal(k3, (O, 2 * H), jnp.float32) * 0.1   # out.weight
    b_o = jax.random.normal(k4, (O,), jnp.float32) * 0.1         # out.bias

    inp = jax.random.normal(k5, (1, 1, H), jnp.float32)          # original single query
    enc = jax.random.normal(k6, (S, H), jnp.float32)             # encoder outputs
    queries = jax.random.normal(k7, (B, H), jnp.float32)         # fused decode steps

    # One-time parameter preparation (f32 path).
    params_f32 = prepare_attn_decoder_params(w_h, b_h, w_o, b_o, jnp.float32)

    # 1) Original single-step forward.
    out1 = jax.block_until_ready(attn_decoder(inp, enc, params_f32))
    ref1 = attn_decoder_ref(inp, enc, w_h, b_h, w_o, b_o)
    assert out1.shape == (1, O)
    assert jnp.allclose(out1, ref1, atol=1e-5, rtol=1e-5), "single-step mismatch"

    # 2) Fused batch-of-decode-steps forward (one pallas_call for B steps).
    outB = jax.block_until_ready(attn_decoder_fused(queries, enc, params_f32))
    refB = jnp.concatenate(
        [attn_decoder_ref(queries[i][None, None], enc, w_h, b_h, w_o, b_o)
         for i in range(B)], axis=0)
    assert outB.shape == (B, O)
    assert jnp.allclose(outB, refB, atol=1e-5, rtol=1e-5), "fused batch mismatch"

    # 3) Sequence-tiled online-softmax path (multiple kv tiles + key masking).
    S2 = 20
    enc2 = jax.random.normal(k6, (S2, H), jnp.float32)
    outT = jax.block_until_ready(attn_decoder_fused(queries, enc2, params_f32, ts=8))
    refT = jnp.concatenate(
        [attn_decoder_ref(queries[i][None, None], enc2, w_h, b_h, w_o, b_o)
         for i in range(B)], axis=0)
    assert jnp.allclose(outT, refT, atol=1e-5, rtol=1e-5), "seq-tiled mismatch"

    # 4) bf16 MXU-operand path (v6e/v7x); accumulation & softmax stay f32.
    params_bf16 = prepare_attn_decoder_params(w_h, b_h, w_o, b_o, jnp.bfloat16)
    outB16 = jax.block_until_ready(attn_decoder_fused(queries, enc, params_bf16))
    assert jnp.allclose(outB16, refB, atol=5e-2, rtol=0), "bf16 path mismatch"

    print("KERNEL_OK")
</pallas_src>

<mosaic_0001>
module attributes {stable_mosaic.version = 11 : i64} {
  func.func @_attn_decoder_kernel(%arg0: i32, %arg1: i32, %arg2: memref<8x32xf32, #tpu.memory_space<vmem>>, %arg3: memref<8x32xf32, #tpu.memory_space<vmem>>, %arg4: memref<32x32xf32, #tpu.memory_space<vmem>>, %arg5: memref<1x32xf32, #tpu.memory_space<vmem>>, %arg6: memref<32x8xf32, #tpu.memory_space<vmem>>, %arg7: memref<32x8xf32, #tpu.memory_space<vmem>>, %arg8: memref<1x8xf32, #tpu.memory_space<vmem>>, %arg9: memref<8x8xf32, #tpu.memory_space<vmem>>, %arg10: memref<8x32xf32, #tpu.memory_space<vmem>>, %arg11: memref<8x1xf32, #tpu.memory_space<vmem>>, %arg12: memref<8x1xf32, #tpu.memory_space<vmem>>, %arg13: memref<8x32xf32, #tpu.memory_space<vmem>>) attributes {dimension_semantics = [#tpu.dimension_semantics<parallel>, #tpu.dimension_semantics<arbitrary>], iteration_bounds = array<i64: 1, 1>, scalar_prefetch = 0 : i64, scratch_operands = 4 : i64, tpu.core_type = #tpu.core_type<tc>, window_params = [{transform_indices = @transform_0, window_bounds = array<i64: 8, 32>}, {transform_indices = @transform_1, window_bounds = array<i64: 8, 32>}, {pipeline_mode = #tpu.pipeline_mode<synchronous>, transform_indices = @transform_2, window_bounds = array<i64: 32, 32>}, {pipeline_mode = #tpu.pipeline_mode<synchronous>, transform_indices = @transform_3, window_bounds = array<i64: 1, 32>}, {pipeline_mode = #tpu.pipeline_mode<synchronous>, transform_indices = @transform_4, window_bounds = array<i64: 32, 8>}, {pipeline_mode = #tpu.pipeline_mode<synchronous>, transform_indices = @transform_5, window_bounds = array<i64: 32, 8>}, {pipeline_mode = #tpu.pipeline_mode<synchronous>, transform_indices = @transform_6, window_bounds = array<i64: 1, 8>}, {transform_indices = @transform_7, window_bounds = array<i64: 8, 8>}]} {
    %c0_i32 = arith.constant 0 : i32
    %0 = arith.cmpi eq, %arg1, %c0_i32 : i32
    %1 = arith.extui %0 : i1 to i32
    %c0_i32_0 = arith.constant 0 : i32
    %2 = arith.cmpi ne, %1, %c0_i32_0 : i32
    scf.if %2 {
      %c0_21 = arith.constant 0 : index
      %c0_22 = arith.constant 0 : index
      %31 = vector.load %arg2[%c0_21, %c0_22] : memref<8x32xf32, #tpu.memory_space<vmem>>, vector<8x32xf32>
      %c0_23 = arith.constant 0 : index
      %c0_24 = arith.constant 0 : index
      %32 = vector.load %arg4[%c0_23, %c0_24] : memref<32x32xf32, #tpu.memory_space<vmem>>, vector<32x32xf32>
      %cst_25 = arith.constant dense<0.000000e+00> : vector<8x32xf32>
      %33 = tpu.matmul %31, %32, %cst_25 {dimension_numbers = #tpu.dot_dimension_numbers<[1], [0], [0], [1], [0, 0, 1, 1], [], []>} : vector<8x32xf32>, vector<32x32xf32>, vector<8x32xf32> -> vector<8x32xf32>
      %c0_26 = arith.constant 0 : index
      %c0_27 = arith.constant 0 : index
      %34 = vector.load %arg5[%c0_26, %c0_27] : memref<1x32xf32, #tpu.memory_space<vmem>>, vector<1x32xf32>
      %35 = vector.broadcast %34 : vector<1x32xf32> to vector<8x32xf32>
      %36 = arith.addf %33, %35 : vector<8x32xf32>
      %cst_28 = arith.constant 0.000000e+00 : f32
      %37 = vector.broadcast %cst_28 : f32 to vector<8x32xf32>
      %38 = arith.maximumf %36, %37 : vector<8x32xf32>
      %c0_29 = arith.constant 0 : index
      %c0_30 = arith.constant 0 : index
      %39 = vector.load %arg10[%c0_29, %c0_30] : memref<8x32xf32, #tpu.memory_space<vmem>>, vector<8x32xf32>
      tpu.vector_store %arg10[%c0_29, %c0_30], %38 {strides = array<i32>} : memref<8x32xf32, #tpu.memory_space<vmem>>, vector<8x32xf32>,
      %cst_31 = arith.constant -1.000000e+30 : f32
      %40 = vector.broadcast %cst_31 : f32 to vector<8x1xf32>
      %c0_32 = arith.constant 0 : index
      %c0_33 = arith.constant 0 : index
      %41 = vector.load %arg11[%c0_32, %c0_33] : memref<8x1xf32, #tpu.memory_space<vmem>>, vector<8x1xf32>
      tpu.vector_store %arg11[%c0_32, %c0_33], %40 {strides = array<i32>} : memref<8x1xf32, #tpu.memory_space<vmem>>, vector<8x1xf32>,
      %cst_34 = arith.constant 0.000000e+00 : f32
      %42 = vector.broadcast %cst_34 : f32 to vector<8x1xf32>
      %c0_35 = arith.constant 0 : index
      %c0_36 = arith.constant 0 : index
      %43 = vector.load %arg12[%c0_35, %c0_36] : memref<8x1xf32, #tpu.memory_space<vmem>>, vector<8x1xf32>
      tpu.vector_store %arg12[%c0_35, %c0_36], %42 {strides = array<i32>} : memref<8x1xf32, #tpu.memory_space<vmem>>, vector<8x1xf32>,
      %cst_37 = arith.constant 0.000000e+00 : f32
      %44 = vector.broadcast %cst_37 : f32 to vector<8x32xf32>
      %c0_38 = arith.constant 0 : index
      %c0_39 = arith.constant 0 : index
      %45 = vector.load %arg13[%c0_38, %c0_39] : memref<8x32xf32, #tpu.memory_space<vmem>>, vector<8x32xf32>
      tpu.vector_store %arg13[%c0_38, %c0_39], %44 {strides = array<i32>} : memref<8x32xf32, #tpu.memory_space<vmem>>, vector<8x32xf32>,
    } else {
    }
    %c0 = arith.constant 0 : index
    %c0_1 = arith.constant 0 : index
    %3 = vector.load %arg10[%c0, %c0_1] : memref<8x32xf32, #tpu.memory_space<vmem>>, vector<8x32xf32>
    %c0_2 = arith.constant 0 : index
    %c0_3 = arith.constant 0 : index
    %4 = vector.load %arg3[%c0_2, %c0_3] : memref<8x32xf32, #tpu.memory_space<vmem>>, vector<8x32xf32>
    %cst = arith.constant dense<0.000000e+00> : vector<8x8xf32>
    %5 = tpu.matmul %3, %4, %cst {dimension_numbers = #tpu.dot_dimension_numbers<[1], [1], [0], [0], [0, 0, 1, 0], [], []>} : vector<8x32xf32>, vector<8x32xf32>, vector<8x8xf32> -> vector<8x8xf32>
    %c0_4 = arith.constant 0 : index
    %c0_5 = arith.constant 0 : index
    %6 = vector.load %arg11[%c0_4, %c0_5] : memref<8x1xf32, #tpu.memory_space<vmem>>, vector<8x1xf32>
    %cst_6 = arith.constant dense<0xFF800000> : vector<8xf32>
    %7 = vector.multi_reduction <maximumf>, %5, %cst_6 [1] : vector<8x8xf32> to vector<8xf32>
    %8 = vector.shape_cast %7 : vector<8xf32> to vector<8x1xf32>
    %9 = arith.maximumf %6, %8 : vector<8x1xf32>
    %10 = arith.subf %6, %9 : vector<8x1xf32>
    %11 = math.exp %10 : vector<8x1xf32>
    %12 = vector.broadcast %9 : vector<8x1xf32> to vector<8x8xf32>
    %13 = arith.subf %5, %12 : vector<8x8xf32>
    %14 = math.exp %13 : vector<8x8xf32>
    %c0_7 = arith.constant 0 : index
    %c0_8 = arith.constant 0 : index
    %15 = vector.load %arg12[%c0_7, %c0_8] : memref<8x1xf32, #tpu.memory_space<vmem>>, vector<8x1xf32>
    %16 = arith.mulf %11, %15 : vector<8x1xf32>
    %cst_9 = arith.constant dense<0.000000e+00> : vector<8xf32>
    %17 = vector.multi_reduction <add>, %14, %cst_9 [1] : vector<8x8xf32> to vector<8xf32>
    %18 = vector.shape_cast %17 : vector<8xf32> to vector<8x1xf32>
    %19 = arith.addf %16, %18 : vector<8x1xf32>
    %c0_10 = arith.constant 0 : index
    %c0_11 = arith.constant 0 : index
    %20 = vector.load %arg12[%c0_10, %c0_11] : memref<8x1xf32, #tpu.memory_space<vmem>>, vector<8x1xf32>
    tpu.vector_store %arg12[%c0_10, %c0_11], %19 {strides = array<i32>} : memref<8x1xf32, #tpu.memory_space<vmem>>, vector<8x1xf32>,
    %c0_12 = arith.constant 0 : index
    %c0_13 = arith.constant 0 : index
    %21 = vector.load %arg13[%c0_12, %c0_13] : memref<8x32xf32, #tpu.memory_space<vmem>>, vector<8x32xf32>
    %22 = vector.broadcast %11 : vector<8x1xf32> to vector<8x32xf32>
    %23 = arith.mulf %22, %21 : vector<8x32xf32>
    %cst_14 = arith.constant dense<0.000000e+00> : vector<8x32xf32>
    %24 = tpu.matmul %14, %4, %cst_14 {dimension_numbers = #tpu.dot_dimension_numbers<[1], [0], [0], [1], [0, 0, 1, 1], [], []>} : vector<8x8xf32>, vector<8x32xf32>, vector<8x32xf32> -> vector<8x32xf32>
    %25 = arith.addf %23, %24 : vector<8x32xf32>
    %c0_15 = arith.constant 0 : index
    %c0_16 = arith.constant 0 : index
    %26 = vector.load %arg13[%c0_15, %c0_16] : memref<8x32xf32, #tpu.memory_space<vmem>>, vector<8x32xf32>
    tpu.vector_store %arg13[%c0_15, %c0_16], %25 {strides = array<i32>} : memref<8x32xf32, #tpu.memory_space<vmem>>, vector<8x32xf32>,
    %c0_17 = arith.constant 0 : index
    %c0_18 = arith.constant 0 : index
    %27 = vector.load %arg11[%c0_17, %c0_18] : memref<8x1xf32, #tpu.memory_space<vmem>>, vector<8x1xf32>
    tpu.vector_store %arg11[%c0_17, %c0_18], %9 {strides = array<i32>} : memref<8x1xf32, #tpu.memory_space<vmem>>, vector<8x1xf32>,
    %c0_i32_19 = arith.constant 0 : i32
    %28 = arith.cmpi eq, %arg1, %c0_i32_19 : i32
    %29 = arith.extui %28 : i1 to i32
    %c0_i32_20 = arith.constant 0 : i32
    %30 = arith.cmpi ne, %29, %c0_i32_20 : i32
    scf.if %30 {
      %c0_21 = arith.constant 0 : index
      %c0_22 = arith.constant 0 : index
      %31 = vector.load %arg13[%c0_21, %c0_22] : memref<8x32xf32, #tpu.memory_space<vmem>>, vector<8x32xf32>
      %c0_23 = arith.constant 0 : index
      %c0_24 = arith.constant 0 : index
      %32 = vector.load %arg12[%c0_23, %c0_24] : memref<8x1xf32, #tpu.memory_space<vmem>>, vector<8x1xf32>
      %33 = tpu.reciprocal %32 {approx = true} : vector<8x1xf32> -> vector<8x1xf32>
      %34 = arith.mulf %32, %33 : vector<8x1xf32>
      %cst_25 = arith.constant 2.000000e+00 : f32
      %35 = vector.broadcast %cst_25 : f32 to vector<8x1xf32>
      %36 = arith.subf %35, %34 : vector<8x1xf32>
      %37 = arith.mulf %33, %36 : vector<8x1xf32>
      %38 = vector.broadcast %37 : vector<8x1xf32> to vector<8x32xf32>
      %39 = arith.mulf %31, %38 : vector<8x32xf32>
      %c0_26 = arith.constant 0 : index
      %c0_27 = arith.constant 0 : index
      %40 = vector.load %arg10[%c0_26, %c0_27] : memref<8x32xf32, #tpu.memory_space<vmem>>, vector<8x32xf32>
      %c0_28 = arith.constant 0 : index
      %c0_29 = arith.constant 0 : index
      %41 = vector.load %arg6[%c0_28, %c0_29] : memref<32x8xf32, #tpu.memory_space<vmem>>, vector<32x8xf32>
      %cst_30 = arith.constant dense<0.000000e+00> : vector<8x8xf32>
      %42 = tpu.matmul %40, %41, %cst_30 {dimension_numbers = #tpu.dot_dimension_numbers<[1], [0], [0], [1], [0, 0, 1, 1], [], []>} : vector<8x32xf32>, vector<32x8xf32>, vector<8x8xf32> -> vector<8x8xf32>
      %c0_31 = arith.constant 0 : index
      %c0_32 = arith.constant 0 : index
      %43 = vector.load %arg7[%c0_31, %c0_32] : memref<32x8xf32, #tpu.memory_space<vmem>>, vector<32x8xf32>
      %cst_33 = arith.constant dense<0.000000e+00> : vector<8x8xf32>
      %44 = tpu.matmul %39, %43, %cst_33 {dimension_numbers = #tpu.dot_dimension_numbers<[1], [0], [0], [1], [0, 0, 1, 1], [], []>} : vector<8x32xf32>, vector<32x8xf32>, vector<8x8xf32> -> vector<8x8xf32>
      %45 = arith.addf %42, %44 : vector<8x8xf32>
      %c0_34 = arith.constant 0 : index
      %c0_35 = arith.constant 0 : index
      %46 = vector.load %arg8[%c0_34, %c0_35] : memref<1x8xf32, #tpu.memory_space<vmem>>, vector<1x8xf32>
      %47 = vector.broadcast %46 : vector<1x8xf32> to vector<8x8xf32>
      %48 = arith.addf %45, %47 : vector<8x8xf32>
      %cst_36 = arith.constant dense<0xFF800000> : vector<8xf32>
      %49 = vector.multi_reduction <maximumf>, %48, %cst_36 [1] : vector<8x8xf32> to vector<8xf32>
      %50 = vector.shape_cast %49 : vector<8xf32> to vector<8x1xf32>
      %51 = vector.broadcast %50 : vector<8x1xf32> to vector<8x8xf32>
      %52 = arith.subf %48, %51 : vector<8x8xf32>
      %53 = math.exp %52 : vector<8x8xf32>
      %cst_37 = arith.constant dense<0.000000e+00> : vector<8xf32>
      %54 = vector.multi_reduction <add>, %53, %cst_37 [1] : vector<8x8xf32> to vector<8xf32>
      %55 = vector.shape_cast %54 : vector<8xf32> to vector<8x1xf32>
      %56 = tpu.reciprocal %55 {approx = true} : vector<8x1xf32> -> vector<8x1xf32>
      %57 = arith.mulf %55, %56 : vector<8x1xf32>
      %cst_38 = arith.constant 2.000000e+00 : f32
      %58 = vector.broadcast %cst_38 : f32 to vector<8x1xf32>
      %59 = arith.subf %58, %57 : vector<8x1xf32>
      %60 = arith.mulf %56, %59 : vector<8x1xf32>
      %61 = vector.broadcast %60 : vector<8x1xf32> to vector<8x8xf32>
      %62 = arith.mulf %53, %61 : vector<8x8xf32>
      %c0_39 = arith.constant 0 : index
      %c0_40 = arith.constant 0 : index
      %63 = vector.load %arg9[%c0_39, %c0_40] : memref<8x8xf32, #tpu.memory_space<vmem>>, vector<8x8xf32>
      tpu.vector_store %arg9[%c0_39, %c0_40], %62 {strides = array<i32>} : memref<8x8xf32, #tpu.memory_space<vmem>>, vector<8x8xf32>,
    } else {
    }
    return
  }
  func.func @transform_0(%arg0: i32, %arg1: i32) -> (i32, i32) {
    %c0_i32 = arith.constant 0 : i32
    %c0_i32_0 = arith.constant 0 : i32
    return %arg0, %c0_i32 : i32, i32
  }
  func.func @transform_1(%arg0: i32, %arg1: i32) -> (i32, i32) {
    %c0_i32 = arith.constant 0 : i32
    %c0_i32_0 = arith.constant 0 : i32
    return %arg1, %c0_i32 : i32, i32
  }
  func.func @transform_2(%arg0: i32, %arg1: i32) -> (i32, i32) {
    %c0_i32 = arith.constant 0 : i32
    %c0_i32_0 = arith.constant 0 : i32
    %c0_i32_1 = arith.constant 0 : i32
    return %c0_i32, %c0_i32_0 : i32, i32
  }
  func.func @transform_3(%arg0: i32, %arg1: i32) -> (i32, i32) {
    %c0_i32 = arith.constant 0 : i32
    %c0_i32_0 = arith.constant 0 : i32
    %c0_i32_1 = arith.constant 0 : i32
    return %c0_i32, %c0_i32_0 : i32, i32
  }
  func.func @transform_4(%arg0: i32, %arg1: i32) -> (i32, i32) {
    %c0_i32 = arith.constant 0 : i32
    %c0_i32_0 = arith.constant 0 : i32
    %c0_i32_1 = arith.constant 0 : i32
    return %c0_i32, %c0_i32_0 : i32, i32
  }
  func.func @transform_5(%arg0: i32, %arg1: i32) -> (i32, i32) {
    %c0_i32 = arith.constant 0 : i32
    %c0_i32_0 = arith.constant 0 : i32
    %c0_i32_1 = arith.constant 0 : i32
    return %c0_i32, %c0_i32_0 : i32, i32
  }
  func.func @transform_6(%arg0: i32, %arg1: i32) -> (i32, i32) {
    %c0_i32 = arith.constant 0 : i32
    %c0_i32_0 = arith.constant 0 : i32
    %c0_i32_1 = arith.constant 0 : i32
    return %c0_i32, %c0_i32_0 : i32, i32
  }
  func.func @transform_7(%arg0: i32, %arg1: i32) -> (i32, i32) {
    %c0_i32 = arith.constant 0 : i32
    %c0_i32_0 = arith.constant 0 : i32
    return %arg0, %c0_i32 : i32, i32
  }
}

</mosaic_0001>

<bundles_post_ra>
// kernel: _attn_decoder_pallas.1
= control target key start
LH: loop header
LB: loop body
LE: loop exit
PB: predicated region body
PF: predicated region fallthrough
CT: control target
= control target key end

     0   :  { %vm42_vm0 = vcmask 261120   ;;  %v611_v0 = vmov 0.0|0.0   ;;  %vm612_vm1 = vmmov 0   ;;  %v613_v4 = vmov 0.0   ;;  %s745_s2 = inlined_call_operand.vmem [shape: f32[32,32], index: 2, kind: input, shape index: {}]   ;;  %s746_s0 = inlined_call_operand.vmem [shape: f32[8,32], index: 0, kind: input, shape index: {}]   ;;  %s747_s1 = inlined_call_operand.vmem [shape: f32[8,32], index: 1, kind: input, shape index: {}]   ;;  %s748_s3 = inlined_call_operand.vmem [shape: f32[1,32], index: 3, kind: input, shape index: {}]   ;;  %s749_s4 = inlined_call_operand.vmem [shape: f32[32,8], index: 4, kind: input, shape index: {}]   ;;  %s750_s5 = inlined_call_operand.vmem [shape: f32[32,8], index: 5, kind: input, shape index: {}]   ;;  %s751_s6 = inlined_call_operand.vmem [shape: f32[1,8], index: 6, kind: input, shape index: {}]   ;;  %s752_s7 = inlined_call_operand.vmem [shape: f32[8,8], index: 7, kind: output, shape index: {}]  }
   0x1   :  { %576 = vmatprep.subr.bf16.mxu0 %v611_v0  ;;  %v31_v1 = vld [vmem:[%s745_s2] sm:$0xff]  ;;  %v32_v2 = vld [vmem:[%s745_s2 + $0x8] sm:$0xff]  ;;  %v33_v3 = vld [vmem:[%s745_s2 + $0x10] sm:$0xff]  ;;  %541 = vmatprep.mubr.msk.f32.mxu0 %vm612_vm1, %v613_v4  ;;  %121 = vst.msk [vmem:[#allocation5] sm:$0xff] %vm42_vm0, %v613_v4  ;;  %vm118_vm2 = vcmask 7168   ;;  %vm202_vm3 = vcmask 64512  }
   0x2   :  { %v577_v5 = vpack.c.bf16 %v32_v2, %v31_v1  ;;  %v34_v6 = vld [vmem:[%s745_s2 + $0x18] sm:$0xff]  ;;  %544 = vmatprep.subr.mxu1 %v613_v4  ;;  %546 = vmatprep.mubr.msk.f32.mxu1 %vm612_vm1, %v613_v4  ;;  %v30_v8 = vld [vmem:[%s746_s0] sm:$0xff]  ;;  %v614_v16 = vmov -1e+30   ;;  %120 = vst.msk [vmem:[#allocation4] sm:$0xff] %vm118_vm2, %v613_v4  ;;  %v615_v20 = vmov 0  }
   0x3   :  { %v580_v7 = vpack.c.bf16 %v34_v6, %v33_v3  ;;  %v123_v9 = vld [vmem:[%s747_s1] sm:$0xff]  ;;  %119 = vst.msk [vmem:[#allocation3] sm:$0xff] %vm118_vm2, %v614_v16  ;;  %599 = vset.pattern.permute.xlu0 %v615_v20  ;;  %600 = vset.pattern.permute.xlu1 %v615_v20  ;;  %v326_v29 = vld [vmem:[%s749_s4 + $0x8] sm:$0xff]  ;;  %v327_v31 = vld [vmem:[%s749_s4 + $0x10] sm:$0xff] }
   0x4   :  { %578 = vmatpush3.bf16.msra.mxu0 %v577_v5  ;;  %545 = vmatpush3.xpose.msk.msra.mxu1 %vm42_vm0, %v123_v9  ;;  %v506_v10 = vld [vmem:[%s748_s3] ss:$0 sm:$0xff]  ;;  %v328_v32 = vld [vmem:[%s749_s4 + $0x18] sm:$0xff]  ;;  %v330_v39 = vld [vmem:[%s750_s5 + $0x8] sm:$0xff] }
   0x5   :  { %579 = vmatprep.subr.bf16.mxu0 %v611_v0  ;;  %549 = vmatprep.subr.mxu1 %v613_v4  ;;  %v325_v28 = vld [vmem:[%s749_s4] sm:$0xff]  ;;  %v592_v35 = vpack.c.bf16 %v328_v32, %v327_v31  ;;  %v331_v40 = vld [vmem:[%s750_s5 + $0x10] sm:$0xff]  ;;  %v332_v42 = vld [vmem:[%s750_s5 + $0x18] sm:$0xff] }
   0x6   :  { %v589_v30 = vpack.c.bf16 %v326_v29, %v325_v28  ;;  %v329_v38 = vld [vmem:[%s750_s5] sm:$0xff]  ;;  %v586_v43 = vpack.c.bf16 %v332_v42, %v331_v40 }
   0x7   :  { %v583_v41 = vpack.c.bf16 %v330_v39, %v329_v38  ;;  %v513_v1 = vld [vmem:[%s751_s6] ss:$0 sm:$0xff] }
   0x8   :  { %581 = vmatpush3.bf16.msra.mxu0 %v580_v7  ;;  %v226_v53 = vld [vmem:[#allocation5] sm:$0xff] }
   0x9   :  { %582 = vmatprep.subr.bf16.mxu0 %v611_v0  ;;  %v218_v44 = vld [vmem:[#allocation4] sm:$0xff] }
   0xa   :  { %v201_v21 = vld [vmem:[#allocation3] sm:$0xff] }
   0xb   :  { %542 = vmatmul.mubr.msk.f32.vlgmr.msra.gmra.mrb[0].mxu0 %vm42_vm0, %v30_v8 }
   0xc   :  { %562 = vmatprep.mubr.msk.f32.mxu0 %vm612_vm1, %v613_v4  ;;  %584 = vmatpush3.bf16.msra.mxu0 %v583_v41 }
   0xd   :  { %585 = vmatprep.subr.bf16.mxu0 %v611_v0 }
  0x10   :  { %587 = vmatpush3.bf16.msra.mxu0 %v586_v43 }
  0xde   :  { %v112_v11 = vpop.f32.mrb[0].mxu0 }
  0xdf   :  { %v113_v12 = vadd.f32 %v506_v10, %v112_v11  ;;  %v543_v13 = vpop.f32.mrb[1].mxu0 }
  0xe1   :  { %v116_v14 = vmax.f32 %v113_v12, 0.0 }
  0xe3   :  { %117 = vst.msk [vmem:[#allocation2] sm:$0xff] %vm42_vm0, %v116_v14 }
  0xea   :  { %v122_v15 = vld [vmem:[#allocation2] sm:$0xff] }
  0xeb   :  { %547 = vmatmul.mubr.msk.f32.vlgmr.msra.gmra.mrb[0].mxu1 %vm42_vm0, %v122_v15 }
  0xec   :  { %550 = vmatpush3.msra.mxu1 %v123_v9  ;;  %551 = vmatprep.mubr.msk.f32.mxu1 %vm612_vm1, %v613_v4 }
  0xed   :  { %588 = vmatprep.subr.bf16.mxu1 %v611_v0 }
 0x1be   :  { %v197_v17 = vpop.f32.mrb[0].mxu1 }
 0x1bf   :  { %v548_v18 = vpop.f32.mrb[1].mxu1  ;;  %v203_v19 = vsel %vm202_vm3, %v197_v17, -inf }
 0x1c0   :  { %204 = vmax.xlane.f32.xlu0 %v203_v19 }
 0x24d   :  { %v205_v22 = vpop.xlane.xlu0 %204 }
 0x24e   :  { %v206_v23 = vmax.f32 %v201_v21, %v205_v22 }
 0x250   :  { %v207_v24 = vsub.f32 %v201_v21, %v206_v23  ;;  %308 = vst.msk [vmem:[#allocation3] sm:$0xff] %vm118_vm2, %v206_v23  ;;  %212 = vperm.xlu0 %599, %v206_v23  }
 0x252   :  { %v208_v36 = vmul.f32 1.442695, %v207_v24 }
 0x2cf   :  { %v213_v25 = vpop.permute.xlu0 %212 }
 0x2d0   :  { %v215_v26 = vsub.f32 %v197_v17, %v213_v25 }
 0x2d2   :  { %v216_v27 = vmul.f32 1.442695, %v215_v26 }
 0x2d4   :  { %601 = vpow2.f32 %v216_v27 }
 0x2d5   :  { %603 = vpow2.f32 %v208_v36 }
 0x2de   :  { %v602_v33 = vpop.eup %601 }
 0x2df   :  { %552 = vmatmul.mubr.msk.f32.vlgmr.msra.gmra.mrb[2].mxu1 %vm202_vm3, %v602_v33  ;;  %v220_v34 = vsel %vm202_vm3, %v602_v33, 0.0  ;;  %v604_v37 = vpop.eup %603 }
 0x2e0   :  { %590 = vmatpush3.bf16.msra.mxu1 %v589_v30  ;;  %221 = vadd.xlane.f32.xlu1 %v220_v34  ;;  %v219_v45 = vmul.f32 %v604_v37, %v218_v44 }
 0x2e1   :  { %591 = vmatprep.subr.bf16.mxu1 %v611_v0  ;;  %573 = vmatprep.mubr.msk.f32.mxu1 %vm612_vm1, %v613_v4 }
 0x2e4   :  { %593 = vmatpush3.bf16.msra.mxu1 %v592_v35 }
 0x2e7   :  { %574 = vmatmul.mubr.msk.f32.vlgmr.msra.gmra.mrb[4].mxu1 %vm42_vm0, %v122_v15 }
 0x2f1   :  { %229 = vperm.xlu1 %600, %v604_v37  }
 0x36d   :  { %v222_v46 = vpop.xlane.xlu1 %221 }
 0x36e   :  { %v223_v47 = vadd.f32 %v222_v46, %v219_v45 }
 0x370   :  { %225 = vst.msk [vmem:[#allocation4] sm:$0xff] %vm118_vm2, %v223_v47 }
 0x371   :  { %v230_v54 = vpop.permute.xlu1 %229 }
 0x372   :  { %v232_v55 = vmul.f32 %v230_v54, %v226_v53 }
 0x377   :  { %v313_v48 = vld [vmem:[#allocation4] sm:$0xff] }
 0x378   :  { %605 = vrcp.f32 %v313_v48 }
 0x382   :  { %v606_v49 = vpop.eup %605 }
 0x383   :  { %v315_v50 = vmul.f32 %v606_v49, %v313_v48 }
 0x385   :  { %v316_v51 = vsub.f32 2.0, %v315_v50 }
 0x387   :  { %v317_v52 = vmul.f32 %v606_v49, %v316_v51 }
 0x389   :  { %320 = vperm.xlu1 %600, %v317_v52  }
 0x3b2   :  { %v302_v56 = vpop.f32.mrb[2].mxu1 }
 0x3b3   :  { %v306_v57 = vadd.f32 %v302_v56, %v232_v55  ;;  %v553_v58 = vpop.f32.mrb[3].mxu1 }
 0x3b5   :  { %307 = vst.msk [vmem:[#allocation5] sm:$0xff] %vm42_vm0, %v306_v57 }
 0x3ba   :  { %v475_v59 = vpop.f32.mrb[4].mxu1 }
 0x3bb   :  { %v575_v60 = vpop.f32.mrb[5].mxu1 }
 0x3bc   :  { %v312_v62 = vld [vmem:[#allocation5] sm:$0xff] }
 0x408   :  { %v321_v61 = vpop.permute.xlu1 %320 }
 0x409   :  { %v323_v63 = vmul.f32 %v321_v61, %v312_v62 }
 0x40b   :  { %563 = vmatmul.mubr.msk.f32.vlgmr.msra.gmra.mrb[2].mxu0 %vm42_vm0, %v323_v63 }
 0x4de   :  { %v402_v0 = vpop.f32.mrb[2].mxu0 }
 0x4df   :  { %v476_v2 = vadd.f32 %v475_v59, %v402_v0  ;;  %v564_v3 = vpop.f32.mrb[3].mxu0 }
 0x4e1   :  { %v486_v4 = vadd.f32 %v513_v1, %v476_v2 }
 0x4e3   :  { %v487_v5 = vsel %vm202_vm3, %v486_v4, -inf }
 0x4e4   :  { %488 = vmax.xlane.f32.xlu1 %v487_v5 }
 0x571   :  { %v489_v6 = vpop.xlane.xlu1 %488 }
 0x572   :  { %v490_v7 = vsub.f32 %v486_v4, %v489_v6 }
 0x574   :  { %v491_v8 = vmul.f32 1.442695, %v490_v7 }
 0x576   :  { %607 = vpow2.f32 %v491_v8 }
 0x580   :  { %v608_v9 = vpop.eup %607 }
 0x581   :  { %v493_v10 = vsel %vm202_vm3, %v608_v9, 0.0 }
 0x582   :  { %494 = vadd.xlane.f32.xlu0 %v493_v10 }
 0x60f   :  { %v495_v11 = vpop.xlane.xlu0 %494 }
 0x610   :  { %609 = vrcp.f32 %v495_v11 }
 0x61a   :  { %v610_v12 = vpop.eup %609 }
 0x61b   :  { %v497_v13 = vmul.f32 %v610_v12, %v495_v11 }
 0x61d   :  { %v498_v14 = vsub.f32 2.0, %v497_v13 }
 0x61f   :  { %v499_v15 = vmul.f32 %v610_v12, %v498_v14 }
 0x621   :  { %v500_v16 = vmul.f32 %v608_v9, %v499_v15 }
 0x623   :  { %501 = vst.msk [vmem:[%s752_s7] sm:$0xff] %vm202_vm3, %v500_v16 }

</bundles_post_ra>
